<compile_context>
chip_gen: v7x
topology: tpu7x:2x2x1
jax: 0.10.0
libtpu: 0.0.40
codegen_flags: <defaults>
</compile_context>

<pallas_src>
import functools

import numpy as np
import jax
import jax.numpy as jnp
from jax.experimental import pallas as pl
from jax.experimental.pallas import tpu as pltpu

_EPS = 1e-6  # torch.nn.PairwiseDistance default eps (added to the difference)


def _round_up(x, m):
    return ((x + m - 1) // m) * m


def _contrastive_kernel(a_idx_ref, p_idx_ref, n_idx_ref, batch_ref, out_ref,
                        *, true_t, true_d, tile_t, pos_margin, neg_margin):
    # a_idx_ref / p_idx_ref / n_idx_ref : (tile_t, 1) int32  (triplet row ids)
    # batch_ref                         : (BS_pad, D_pad) f32, VMEM-resident
    # out_ref                           : (1, 1) f32, resident accumulator
    i = pl.program_id(0)

    @pl.when(i == 0)
    def _init():
        out_ref[...] = jnp.zeros_like(out_ref)

    bs_pad, d_pad = batch_ref.shape
    batch = batch_ref[...]  # (BS_pad, D_pad) f32

    # --- in-kernel row gather via one-hot matmul on the MXU (exact in f32) ---
    col = jax.lax.broadcasted_iota(jnp.int32, (tile_t, bs_pad), 1)

    def gather(idx_ref):
        onehot = (idx_ref[...] == col).astype(jnp.float32)      # (tile_t, BS_pad)
        return jnp.dot(onehot, batch,
                       preferred_element_type=jnp.float32,
                       precision=jax.lax.Precision.HIGHEST)     # (tile_t, D_pad)

    a = gather(a_idx_ref)
    p = gather(p_idx_ref)
    n = gather(n_idx_ref)

    # eps only on real (un-padded) lanes so padded lanes contribute exactly 0.
    if d_pad == true_d:
        eps_row = jnp.float32(_EPS)
    else:
        lane = jax.lax.broadcasted_iota(jnp.int32, (1, d_pad), 1)
        eps_row = jnp.where(lane < true_d, _EPS, 0.0).astype(jnp.float32)

    dpos = (a - p) + eps_row
    dneg = (a - n) + eps_row

    # L2 pairwise distance per triplet (cross-lane reduce on the XLU).
    pos_d = jnp.sqrt(jnp.sum(dpos * dpos, axis=-1, keepdims=True))  # (tile_t, 1)
    neg_d = jnp.sqrt(jnp.sum(dneg * dneg, axis=-1, keepdims=True))  # (tile_t, 1)

    if pos_margin == 0.0:
        pos_h = pos_d                      # sqrt >= 0 -> relu is a no-op
    else:
        pos_h = jnp.maximum(pos_d - pos_margin, 0.0)
    neg_h = jnp.maximum(neg_margin - neg_d, 0.0)

    # Mask padded rows of the (possibly partial) last tile.
    row = i * tile_t + jax.lax.broadcasted_iota(jnp.int32, (tile_t, 1), 0)
    valid = (row < true_t).astype(jnp.float32)

    out_ref[...] += jnp.sum((pos_h + neg_h) * valid, keepdims=True)  # (1, 1)

    @pl.when(i == pl.num_programs(0) - 1)
    def _finalize():
        # mean(relu_pos) + mean(relu_neg) == (sum_pos + sum_neg) / T
        out_ref[...] = out_ref[...] * jnp.float32(1.0 / true_t)


def contrastive_loss_pallas(batch, anchors, positives, negatives,
                            pos_margin=0.0, neg_margin=1.0, tile_t=256):
    """batch: (BS, DIM) f32; anchors/positives/negatives: int32 index arrays (T,)."""
    batch = jnp.asarray(batch, jnp.float32)
    anchors = jnp.asarray(anchors, jnp.int32)
    positives = jnp.asarray(positives, jnp.int32)
    negatives = jnp.asarray(negatives, jnp.int32)

    bs, dim = batch.shape
    t = int(anchors.shape[0])
    if t == 0:
        raise ValueError("batchminer produced no triplets")

    # Lane/sublane-dense padding of the embedding matrix.
    bs_pad = _round_up(bs, 8)
    d_pad = _round_up(dim, 128)
    if (bs_pad, d_pad) != (bs, dim):
        batch = jnp.pad(batch, ((0, bs_pad - bs), (0, d_pad - dim)))

    # Tile the triplet axis.
    tile_t = min(int(tile_t), _round_up(t, 8))
    tile_t = _round_up(tile_t, 8)
    t_pad = _round_up(t, tile_t)
    grid = (t_pad // tile_t,)

    def pad_idx(ix):
        ix = jnp.pad(ix, (0, t_pad - t))          # padded rows masked in-kernel
        return ix.reshape(t_pad, 1)

    a_idx = pad_idx(anchors)
    p_idx = pad_idx(positives)
    n_idx = pad_idx(negatives)

    kernel = functools.partial(
        _contrastive_kernel,
        true_t=t, true_d=dim, tile_t=tile_t,
        pos_margin=float(pos_margin), neg_margin=float(neg_margin),
    )

    idx_spec = pl.BlockSpec((tile_t, 1), lambda i: (i, 0))
    batch_spec = pl.BlockSpec((bs_pad, d_pad), lambda i: (0, 0))  # resident

    # Explicit VMEM budget (safe on v5e/v6e 128 MiB and v7x 64 MiB).
    vmem_bytes = (2 * bs_pad * d_pad * 4           # batch (double-buffered)
                  + 3 * 2 * tile_t * 128 * 4       # index tiles
                  + 2 * 8 * 128 * 4                # output
                  + (4 << 20))                     # headroom for intermediates
    vmem_bytes = min(max(vmem_bytes, 4 << 20), 32 << 20)

    out = pl.pallas_call(
        kernel,
        out_shape=jax.ShapeDtypeStruct((1, 1), jnp.float32),
        grid_spec=pltpu.PrefetchScalarGridSpec(
            num_scalar_prefetch=0,
            grid=grid,
            in_specs=[idx_spec, idx_spec, idx_spec, batch_spec],
            out_specs=pl.BlockSpec((1, 1), lambda i: (0, 0)),
        ),
        compiler_params=pltpu.CompilerParams(
            dimension_semantics=("arbitrary",),
            vmem_limit_bytes=int(vmem_bytes),
        ),
    )(a_idx, p_idx, n_idx, batch)
    return out[0, 0]


def simple_batchminer(labels):
    """Deterministic stand-in for the batchminer registry: for each anchor i
    pick the first other sample with the same label (positive) and the first
    sample with a different label (negative)."""
    labels = np.asarray(labels).reshape(-1)
    bs = labels.shape[0]
    triplets = []
    for i in range(bs):
        pos_cands = [j for j in range(bs) if labels[j] == labels[i] and j != i]
        neg_cands = [j for j in range(bs) if labels[j] != labels[i]]
        if not pos_cands or not neg_cands:
            continue
        triplets.append((i, pos_cands[0], neg_cands[0]))
    return triplets


def reference_loss(batch, anchors, positives, negatives, pos_margin, neg_margin):
    A = batch[anchors, :]
    P = batch[positives, :]
    N = batch[negatives, :]
    pos_d = jnp.sqrt(jnp.sum((A - P + _EPS) ** 2, axis=-1))
    neg_d = jnp.sqrt(jnp.sum((A - N + _EPS) ** 2, axis=-1))
    pos_loss = jnp.mean(jnp.maximum(pos_d - pos_margin, 0.0))
    neg_loss = jnp.mean(jnp.maximum(neg_margin - neg_d, 0.0))
    return pos_loss + neg_loss


if __name__ == "__main__":
    key = jax.random.PRNGKey(0)

    # Small embedding batch; BS and DIM deliberately NOT (8,128)-aligned to
    # exercise the padding/masking paths; T=14 triplets is not a multiple of
    # the tile so the last-tile row mask is exercised too.
    BS, DIM = 15, 96
    batch = jax.random.normal(key, (BS, DIM), dtype=jnp.float32)
    labels = np.array([0, 0, 1, 1, 2, 2, 3, 3, 4, 4, 5, 5, 6, 6, 7],
                      dtype=np.int32)

    # "opt" hyperparameters (deterministic, in-script)
    pos_margin = 0.0
    neg_margin = 1.0

    triplets = simple_batchminer(labels)
    anchors = np.array([t[0] for t in triplets], dtype=np.int32)
    positives = np.array([t[1] for t in triplets], dtype=np.int32)
    negatives = np.array([t[2] for t in triplets], dtype=np.int32)

    # tile_t=8 -> grid=(2,) so accumulation across grid steps is exercised.
    loss = contrastive_loss_pallas(batch, anchors, positives, negatives,
                                   pos_margin, neg_margin, tile_t=8)
    loss = jax.block_until_ready(loss)

    ref = reference_loss(batch, anchors, positives, negatives,
                         pos_margin, neg_margin)
    np.testing.assert_allclose(np.asarray(loss), np.asarray(ref),
                               rtol=1e-5, atol=1e-5)

    print("KERNEL_OK")
</pallas_src>

<mosaic_0001>
module attributes {stable_mosaic.version = 11 : i64} {
  func.func @_contrastive_kernel(%arg0: i32, %arg1: memref<8x1xi32, #tpu.memory_space<vmem>>, %arg2: memref<8x1xi32, #tpu.memory_space<vmem>>, %arg3: memref<8x1xi32, #tpu.memory_space<vmem>>, %arg4: memref<16x128xf32, #tpu.memory_space<vmem>>, %arg5: memref<1x1xf32, #tpu.memory_space<vmem>>) attributes {dimension_semantics = [#tpu.dimension_semantics<arbitrary>], iteration_bounds = array<i64: 2>, scalar_prefetch = 0 : i64, scratch_operands = 0 : i64, tpu.core_type = #tpu.core_type<tc>, window_params = [{transform_indices = @transform_0, window_bounds = array<i64: 8, 1>}, {transform_indices = @transform_1, window_bounds = array<i64: 8, 1>}, {transform_indices = @transform_2, window_bounds = array<i64: 8, 1>}, {pipeline_mode = #tpu.pipeline_mode<synchronous>, transform_indices = @transform_3, window_bounds = array<i64: 16, 128>}, {pipeline_mode = #tpu.pipeline_mode<synchronous>, transform_indices = @transform_4, window_bounds = array<i64: 1, 1>}]} {
    %c0_i32 = arith.constant 0 : i32
    %0 = arith.cmpi eq, %arg0, %c0_i32 : i32
    %1 = arith.extui %0 : i1 to i32
    %c0_i32_0 = arith.constant 0 : i32
    %2 = arith.cmpi ne, %1, %c0_i32_0 : i32
    scf.if %2 {
      %cst_22 = arith.constant 0.000000e+00 : f32
      %68 = vector.broadcast %cst_22 : f32 to vector<1x1xf32>
      %c0_23 = arith.constant 0 : index
      %c0_24 = arith.constant 0 : index
      %69 = vector.load %arg5[%c0_23, %c0_24] : memref<1x1xf32, #tpu.memory_space<vmem>>, vector<1x1xf32>
      tpu.vector_store %arg5[%c0_23, %c0_24], %68 {strides = array<i32>} : memref<1x1xf32, #tpu.memory_space<vmem>>, vector<1x1xf32>,
    } else {
    }
    %c0 = arith.constant 0 : index
    %c0_1 = arith.constant 0 : index
    %3 = vector.load %arg4[%c0, %c0_1] : memref<16x128xf32, #tpu.memory_space<vmem>>, vector<16x128xf32>
    %4 = tpu.iota {dimensions = array<i32: 1>} : vector<8x16xi32>
    %c0_2 = arith.constant 0 : index
    %c0_3 = arith.constant 0 : index
    %5 = vector.load %arg1[%c0_2, %c0_3] : memref<8x1xi32, #tpu.memory_space<vmem>>, vector<8x1xi32>
    %6 = vector.broadcast %5 : vector<8x1xi32> to vector<8x16xi32>
    %7 = arith.cmpi eq, %6, %4 : vector<8x16xi32>
    %8 = arith.extui %7 : vector<8x16xi1> to vector<8x16xi32>
    %9 = arith.sitofp %8 : vector<8x16xi32> to vector<8x16xf32>
    %cst = arith.constant dense<0.000000e+00> : vector<8x128xf32>
    %10 = tpu.matmul %9, %3, %cst {dimension_numbers = #tpu.dot_dimension_numbers<[1], [0], [0], [1], [0, 0, 1, 1], [], []>, precision = #tpu.contract_precision<fp32>} : vector<8x16xf32>, vector<16x128xf32>, vector<8x128xf32> -> vector<8x128xf32>
    %c0_4 = arith.constant 0 : index
    %c0_5 = arith.constant 0 : index
    %11 = vector.load %arg2[%c0_4, %c0_5] : memref<8x1xi32, #tpu.memory_space<vmem>>, vector<8x1xi32>
    %12 = vector.broadcast %11 : vector<8x1xi32> to vector<8x16xi32>
    %13 = arith.cmpi eq, %12, %4 : vector<8x16xi32>
    %14 = arith.extui %13 : vector<8x16xi1> to vector<8x16xi32>
    %15 = arith.sitofp %14 : vector<8x16xi32> to vector<8x16xf32>
    %cst_6 = arith.constant dense<0.000000e+00> : vector<8x128xf32>
    %16 = tpu.matmul %15, %3, %cst_6 {dimension_numbers = #tpu.dot_dimension_numbers<[1], [0], [0], [1], [0, 0, 1, 1], [], []>, precision = #tpu.contract_precision<fp32>} : vector<8x16xf32>, vector<16x128xf32>, vector<8x128xf32> -> vector<8x128xf32>
    %c0_7 = arith.constant 0 : index
    %c0_8 = arith.constant 0 : index
    %17 = vector.load %arg3[%c0_7, %c0_8] : memref<8x1xi32, #tpu.memory_space<vmem>>, vector<8x1xi32>
    %18 = vector.broadcast %17 : vector<8x1xi32> to vector<8x16xi32>
    %19 = arith.cmpi eq, %18, %4 : vector<8x16xi32>
    %20 = arith.extui %19 : vector<8x16xi1> to vector<8x16xi32>
    %21 = arith.sitofp %20 : vector<8x16xi32> to vector<8x16xf32>
    %cst_9 = arith.constant dense<0.000000e+00> : vector<8x128xf32>
    %22 = tpu.matmul %21, %3, %cst_9 {dimension_numbers = #tpu.dot_dimension_numbers<[1], [0], [0], [1], [0, 0, 1, 1], [], []>, precision = #tpu.contract_precision<fp32>} : vector<8x16xf32>, vector<16x128xf32>, vector<8x128xf32> -> vector<8x128xf32>
    %23 = tpu.iota {dimensions = array<i32: 1>} : vector<1x128xi32>
    %c96_i32 = arith.constant 96 : i32
    %24 = vector.broadcast %c96_i32 : i32 to vector<1x128xi32>
    %25 = arith.cmpi slt, %23, %24 : vector<1x128xi32>
    %cst_10 = arith.constant 9.99999997E-7 : f32
    %cst_11 = arith.constant 0.000000e+00 : f32
    %26 = vector.broadcast %cst_10 : f32 to vector<1x128xf32>
    %27 = vector.broadcast %cst_11 : f32 to vector<1x128xf32>
    %28 = arith.select %25, %26, %27 : vector<1x128xi1>, vector<1x128xf32>
    %29 = arith.subf %10, %16 : vector<8x128xf32>
    %30 = vector.broadcast %28 : vector<1x128xf32> to vector<8x128xf32>
    %31 = arith.addf %29, %30 : vector<8x128xf32>
    %32 = arith.subf %10, %22 : vector<8x128xf32>
    %33 = vector.broadcast %28 : vector<1x128xf32> to vector<8x128xf32>
    %34 = arith.addf %32, %33 : vector<8x128xf32>
    %35 = arith.mulf %31, %31 : vector<8x128xf32>
    %cst_12 = arith.constant dense<0.000000e+00> : vector<8xf32>
    %36 = vector.multi_reduction <add>, %35, %cst_12 [1] : vector<8x128xf32> to vector<8xf32>
    %37 = vector.shape_cast %36 : vector<8xf32> to vector<8x1xf32>
    %38 = math.sqrt %37 : vector<8x1xf32>
    %39 = arith.mulf %34, %34 : vector<8x128xf32>
    %cst_13 = arith.constant dense<0.000000e+00> : vector<8xf32>
    %40 = vector.multi_reduction <add>, %39, %cst_13 [1] : vector<8x128xf32> to vector<8xf32>
    %41 = vector.shape_cast %40 : vector<8xf32> to vector<8x1xf32>
    %42 = math.sqrt %41 : vector<8x1xf32>
    %cst_14 = arith.constant 1.000000e+00 : f32
    %43 = vector.broadcast %cst_14 : f32 to vector<8x1xf32>
    %44 = arith.subf %43, %42 : vector<8x1xf32>
    %cst_15 = arith.constant 0.000000e+00 : f32
    %45 = vector.broadcast %cst_15 : f32 to vector<8x1xf32>
    %46 = arith.maximumf %44, %45 : vector<8x1xf32>
    %c8_i32 = arith.constant 8 : i32
    %47 = arith.muli %arg0, %c8_i32 : i32
    %48 = tpu.iota {dimensions = array<i32: 0>} : vector<8x1xi32>
    %49 = vector.broadcast %47 : i32 to vector<8x1xi32>
    %50 = arith.addi %49, %48 : vector<8x1xi32>
    %c14_i32 = arith.constant 14 : i32
    %51 = vector.broadcast %c14_i32 : i32 to vector<8x1xi32>
    %52 = arith.cmpi slt, %50, %51 : vector<8x1xi32>
    %53 = arith.extui %52 : vector<8x1xi1> to vector<8x1xi32>
    %54 = arith.sitofp %53 : vector<8x1xi32> to vector<8x1xf32>
    %c0_16 = arith.constant 0 : index
    %c0_17 = arith.constant 0 : index
    %55 = vector.load %arg5[%c0_16, %c0_17] : memref<1x1xf32, #tpu.memory_space<vmem>>, vector<1x1xf32>
    %56 = arith.addf %38, %46 : vector<8x1xf32>
    %57 = arith.mulf %56, %54 : vector<8x1xf32>
    %58 = vector.shape_cast %57 : vector<8x1xf32> to vector<1x8x1xf32>
    %cst_18 = arith.constant dense<0.000000e+00> : vector<1xf32>
    %59 = vector.multi_reduction <add>, %58, %cst_18 [1, 2] : vector<1x8x1xf32> to vector<1xf32>
    %60 = vector.shape_cast %59 : vector<1xf32> to vector<1x1x1xf32>
    %61 = vector.extract %60[0, 0, 0] : f32 from vector<1x1x1xf32>
    %62 = vector.broadcast %61 : f32 to vector<1x1xf32>
    %63 = arith.addf %55, %62 : vector<1x1xf32>
    %c0_19 = arith.constant 0 : index
    %c0_20 = arith.constant 0 : index
    %64 = vector.load %arg5[%c0_19, %c0_20] : memref<1x1xf32, #tpu.memory_space<vmem>>, vector<1x1xf32>
    tpu.vector_store %arg5[%c0_19, %c0_20], %63 {strides = array<i32>} : memref<1x1xf32, #tpu.memory_space<vmem>>, vector<1x1xf32>,
    %c1_i32 = arith.constant 1 : i32
    %65 = arith.cmpi eq, %arg0, %c1_i32 : i32
    %66 = arith.extui %65 : i1 to i32
    %c0_i32_21 = arith.constant 0 : i32
    %67 = arith.cmpi ne, %66, %c0_i32_21 : i32
    scf.if %67 {
      %c0_22 = arith.constant 0 : index
      %c0_23 = arith.constant 0 : index
      %68 = vector.load %arg5[%c0_22, %c0_23] : memref<1x1xf32, #tpu.memory_space<vmem>>, vector<1x1xf32>
      %cst_24 = arith.constant 0.0714285746 : f32
      %69 = vector.broadcast %cst_24 : f32 to vector<1x1xf32>
      %70 = arith.mulf %68, %69 : vector<1x1xf32>
      %c0_25 = arith.constant 0 : index
      %c0_26 = arith.constant 0 : index
      %71 = vector.load %arg5[%c0_25, %c0_26] : memref<1x1xf32, #tpu.memory_space<vmem>>, vector<1x1xf32>
      tpu.vector_store %arg5[%c0_25, %c0_26], %70 {strides = array<i32>} : memref<1x1xf32, #tpu.memory_space<vmem>>, vector<1x1xf32>,
    } else {
    }
    return
  }
  func.func @transform_0(%arg0: i32) -> (i32, i32) {
    %c0_i32 = arith.constant 0 : i32
    %c0_i32_0 = arith.constant 0 : i32
    return %arg0, %c0_i32 : i32, i32
  }
  func.func @transform_1(%arg0: i32) -> (i32, i32) {
    %c0_i32 = arith.constant 0 : i32
    %c0_i32_0 = arith.constant 0 : i32
    return %arg0, %c0_i32 : i32, i32
  }
  func.func @transform_2(%arg0: i32) -> (i32, i32) {
    %c0_i32 = arith.constant 0 : i32
    %c0_i32_0 = arith.constant 0 : i32
    return %arg0, %c0_i32 : i32, i32
  }
  func.func @transform_3(%arg0: i32) -> (i32, i32) {
    %c0_i32 = arith.constant 0 : i32
    %c0_i32_0 = arith.constant 0 : i32
    %c0_i32_1 = arith.constant 0 : i32
    return %c0_i32, %c0_i32_0 : i32, i32
  }
  func.func @transform_4(%arg0: i32) -> (i32, i32) {
    %c0_i32 = arith.constant 0 : i32
    %c0_i32_0 = arith.constant 0 : i32
    %c0_i32_1 = arith.constant 0 : i32
    return %c0_i32, %c0_i32_0 : i32, i32
  }
}

</mosaic_0001>

<bundles_post_ra>
// kernel: tpu_custom_call.1
= control target key start
LH: loop header
LB: loop body
LE: loop exit
PB: predicated region body
PF: predicated region fallthrough
CT: control target
= control target key end

     0   :  { %9 = vsyncpa [#allocation3], 0  ;;  %s2151_s15 = smov 0   ;;  %s2319_s0 = inlined_call_operand.vmem [shape: s32[16,1], index: 0, kind: input, shape index: {}]   ;;  %s2320_s1 = inlined_call_operand.vmem [shape: s32[16,1], index: 1, kind: input, shape index: {}]   ;;  %s2321_s2 = inlined_call_operand.vmem [shape: s32[16,1], index: 2, kind: input, shape index: {}]   ;;  %s2322_s3 = inlined_call_operand.vmem [shape: f32[16,128], index: 3, kind: input, shape index: {}]   ;;  %s2323_s4 = inlined_call_operand.hbm [shape: f32[1,1], index: 4, kind: output, shape index: {}]  }
   0x1 LB: > { %s2157_s16 = sadd.s32 4294967295, %s2118_s15   ;;  %p1767_p0 = scmp.ge.s32.totalorder %s2118_s15, 1  ;;  %s2118_s15 = sphi %s2151_s15, %s15_s15  }
   0x2   : > { %p175_p1 = scmp.lt.s32.totalorder %s2118_s15, 3 }
   0x4   : > { %p176_p2 = pnand %p1767_p0, %p175_p1 }
   0x5   : > { %p203_p3 = scmp.lt.s32.totalorder (!%p176_p2), %s2157_s16, 1  ;;  %p1771_p4 = scmp.ne.s32.totalorder (!%p176_p2), %s2157_s16, 0 }
   0x6   : > { %179 = sbr.rel (%p176_p2) target bundleno = 845 (0x34d), region = 36 }
   0xd   : > { %s204_s17 = scalar_select %p203_p3, %s2157_s16, 1 }
   0xe   : > { %218 = sbr.rel (%p1771_p4) target bundleno = 21 (0x15), region = 40  ;;  %vm219_vm0 = vcmask (!%p1771_p4), 0   ;;  %v2120_v0 = vmov (!%p1771_p4), 0.0  }
   0xf   : > { %s1768_s18 = sshll.u32 %s204_s17, 3  ;;  %220 = vst.msk [vmem:[#allocation2] sm:$0x1] (!%p1771_p4), %vm219_vm0, %v2120_v0 }
  0x10   : > { %s206_s21 = scalar_lea.vmem %s2319_s0, %s1768_s18  ;;  %s210_s24 = scalar_lea.vmem %s2320_s1, %s1768_s18 }
  0x11   : > { %s214_s27 = scalar_lea.vmem %s2321_s2, %s1768_s18 }
  0x15 PF: > { %v225_v1 = vld [vmem:[%s206_s21] sm:$0xff]  ;;  %v2121_v3 = vmov 0   ;;  %v222_v5 = vld [vmem:[%s2322_s3 + $0x8] sm:$0xff]  ;;  %v2122_v10 = vmov 0.0|0.0   ;;  %vm2123_vm1 = vmmov 0   ;;  %v2124_v11 = vmov 0.0  }
  0x16   : > { %v695_v2 = vld [vmem:[%s210_s24] sm:$0xff]  ;;  %2076 = vset.pattern.permute.xlu0 %v2121_v3  ;;  %2077 = vset.pattern.permute.xlu1 %v2121_v3  ;;  %v240_v7 = vand.u32 4294901760, %v222_v5  ;;  %v223_v23 = vlaneseq  ;;  %vm232_vm2 = vcmask 130048   ;;  %s1784_s6 = sshll.u32 %s2157_s16, 3  ;;  %vm1672_vm12 = vcmask 7168   ;;  %p1786_p5 = scmp.ne.s32.totalorder %s2157_s16, 1 }
  0x17   : > { %v221_v4 = vld [vmem:[%s2322_s3] sm:$0xff]  ;;  %227 = vperm.xlu0 %2076, %v225_v1   ;;  %697 = vperm.xlu1 %2077, %v695_v2   ;;  %v1664_v1 = vstv %s1784_s6  ;;  %vm1685_vm13 = vcmask 0  }
  0x18   : > { %v237_v6 = vand.u32 4294901760, %v221_v4  ;;  %v1164_v8 = vld [vmem:[%s214_s27] sm:$0xff]  ;;  %1980 = vmatprep.subr.bf16.mxu0 %v2122_v10  ;;  %1971 = vmatprep.subr.bf16.mxu1 %v2122_v10  ;;  %v322_v13 = vsub.f32 %v222_v5, %v240_v7  ;;  %v2196_v24 = vand.u32 127, %v223_v23  ;;  %v1663_v0 = vshrl.u32 %v223_v23, 7 }
  0x19   : > { %1870 = vmatprep.mubr.msk.f32.mxu0 %vm2123_vm1, %v2124_v11  ;;  %1849 = vmatprep.mubr.msk.f32.mxu1 %vm2123_vm1, %v2124_v11 }
  0x1a   : > { %v2179_v9 = vpack.c.bf16 %v240_v7, %v237_v6  ;;  %v315_v12 = vsub.f32 %v221_v4, %v237_v6  ;;  %v323_v15 = vand.u32 4294901760, %v322_v13  ;;  %vm1633_vm6 = vcmp.lt.s32.totalorder %v2196_v24, 96 }
  0x1b   : > { %1166 = vperm.xlu0 %2076, %v1164_v8   ;;  %v1634_v52 = vsel %vm1633_vm6, 1e-06, %v2124_v11  ;;  %v1665_v4 = vadd.s32 %v1664_v1, %v1663_v0 }
  0x1c   : > { %1982 = vmatpush3.bf16.msra.mxu0 %v2179_v9  ;;  %1973 = vmatpush3.bf16.msra.mxu1 %v2179_v9  ;;  %v316_v14 = vand.u32 4294901760, %v315_v12  ;;  %v324_v18 = vsub.f32 %v322_v13, %v323_v15  ;;  %v2193_v22 = vpack.c.bf16 %v322_v13, %v315_v12 }
  0x1d   : > { %1983 = vmatprep.subr.bf16.mxu0 %v2122_v10  ;;  %1974 = vmatprep.subr.bf16.mxu1 %v2122_v10  ;;  %vm1666_vm9 = vcmp.lt.s32.totalorder %v1665_v4, 14 }
  0x1e   : > { %v2191_v16 = vpack.c.bf16 %v323_v15, %v316_v14  ;;  %v317_v17 = vsub.f32 %v315_v12, %v316_v14  ;;  %v325_v20 = vand.u32 4294901760, %v324_v18 }
  0x20   : > { %v318_v19 = vand.u32 4294901760, %v317_v17 }
  0x22   : > { %v1975_v21 = vpack.c.bf16 %v325_v20, %v318_v19 }
  0x96   : > { %v228_v25 = vpop.permute.xlu0 %227  ;;  %v698_v31 = vpop.permute.xlu1 %697 }
  0x97   : > { %vm229_vm3 = vcmp.eq.s32.totalorder %v228_v25, %v2196_v24  ;;  %vm699_vm5 = vcmp.eq.s32.totalorder %v698_v31, %v2196_v24 }
  0x98   : > { %v1772_v26 = vsel %vm229_vm3, 1.0, %v2124_v11  ;;  %v2213_v36 = vsel %vm699_vm5, 1.0, %v2124_v11 }
  0x99   : > { %v234_v27 = vsel %vm232_vm2, %v1772_v26, 0  ;;  %v703_v38 = vsel %vm232_vm2, %v2213_v36, 0 }
  0x9a   : > { %v304_v28 = vsub.f32 %v234_v27, %v234_v27  ;;  %v1167_v29 = vpop.permute.xlu0 %1166  ;;  %v773_v39 = vsub.f32 %v703_v38, %v703_v38  ;;  %v1669_v27 = vld [vmem:[#allocation2] sm:$0x1] }
  0x9b   : > { %vm1168_vm4 = vcmp.eq.s32.totalorder %v1167_v29, %v2196_v24 }
  0x9c   : > { %v305_v30 = vand.u32 4294901760, %v304_v28  ;;  %v2203_v32 = vsel %vm1168_vm4, 1.0, %v2124_v11  ;;  %v774_v42 = vand.u32 4294901760, %v773_v39 }
  0x9d   : > { %v1172_v35 = vsel %vm232_vm2, %v2203_v32, 0 }
  0x9e   : > { %1871 = vmatmul.mubr.f32.vlgmr.msra.gmra.mrb[0].mxu0 %v305_v30  ;;  %v306_v33 = vsub.f32 %v304_v28, %v305_v30  ;;  %v1242_v37 = vsub.f32 %v1172_v35, %v1172_v35  ;;  %v775_v44 = vsub.f32 %v773_v39, %v774_v42 }
  0x9f   : > { %1985 = vmatpush3.bf16.msra.mxu0 %v2191_v16  ;;  %1877 = vmatprep.mubr.msk.f32.mxu0 %vm2123_vm1, %v2124_v11 }
  0xa0   : > { %v307_v34 = vand.u32 4294901760, %v306_v33  ;;  %1986 = vmatprep.subr.bf16.mxu0 %v2122_v10  ;;  %v1243_v40 = vand.u32 4294901760, %v1242_v37  ;;  %v776_v45 = vand.u32 4294901760, %v775_v44 }
  0xa2   : > { %1850 = vmatmul.mubr.f32.vlgmr.msra.gmra.mrb[0].mxu1 %v307_v34  ;;  %v1244_v41 = vsub.f32 %v1242_v37, %v1243_v40 }
  0xa3   : > { %1976 = vmatpush3.bf16.msra.mxu1 %v1975_v21  ;;  %1856 = vmatprep.mubr.msk.f32.mxu1 %vm2123_vm1, %v2124_v11 }
  0xa4   : > { %1977 = vmatprep.subr.bf16.mxu1 %v2122_v10  ;;  %v1245_v43 = vand.u32 4294901760, %v1244_v41 }
  0xa6   : > { %1878 = vmatmul.mubr.msk.f32.vlgmr.msra.gmra.mrb[0].mxu0 %vm232_vm2, %v1772_v26 }
  0xa7   : > { %1988 = vmatpush3.bf16.msra.mxu0 %v2179_v9  ;;  %1884 = vmatprep.mubr.msk.f32.mxu0 %vm2123_vm1, %v2124_v11 }
  0xa8   : > { %2007 = vmatprep.subr.bf16.mxu0 %v2122_v10 }
  0xaa   : > { %1857 = vmatmul.mubr.msk.f32.vlgmr.msra.gmra.mrb[0].mxu1 %vm232_vm2, %v1772_v26 }
  0xab   : > { %1979 = vmatpush3.bf16.msra.mxu1 %v2193_v22  ;;  %1863 = vmatprep.mubr.msk.f32.mxu1 %vm2123_vm1, %v2124_v11 }
  0xac   : > { %1989 = vmatprep.subr.bf16.mxu1 %v2122_v10 }
  0xae   : > { %1885 = vmatmul.mubr.msk.f32.vlgmr.msra.gmra.mrb[0].mxu0 %vm232_vm2, %v1772_v26 }
  0xaf   : > { %2009 = vmatpush3.bf16.msra.mxu0 %v2179_v9  ;;  %1933 = vmatprep.mubr.msk.f32.mxu0 %vm2123_vm1, %v2124_v11 }
  0xb0   : > { %2010 = vmatprep.subr.bf16.mxu0 %v2122_v10 }
  0xb2   : > { %1864 = vmatmul.mubr.f32.vlgmr.msra.gmra.mrb[0].mxu1 %v304_v28  ;;  %1934 = vmatmul.mubr.f32.vlgmr.msra.gmra.mrb[2].mxu0 %v1245_v43 }
  0xb3   : > { %1991 = vmatpush3.bf16.msra.mxu1 %v2179_v9  ;;  %2012 = vmatpush3.bf16.msra.mxu0 %v1975_v21 }
  0xb4   : > { %1891 = vmatprep.mubr.msk.f32.mxu1 %vm2123_vm1, %v2124_v11  ;;  %1992 = vmatprep.subr.bf16.mxu1 %v2122_v10 }
  0xb5   : > { %1940 = vmatprep.mubr.msk.f32.mxu0 %vm2123_vm1, %v2124_v11  ;;  %2013 = vmatprep.subr.bf16.mxu0 %v2122_v10 }
  0xb6   : > { %1892 = vmatmul.mubr.f32.vlgmr.msra.gmra.mrb[2].mxu1 %v776_v45 }
  0xb7   : > { %1994 = vmatpush3.bf16.msra.mxu1 %v1975_v21  ;;  %1898 = vmatprep.mubr.msk.f32.mxu1 %vm2123_vm1, %v2124_v11 }
  0xb8   : > { %1995 = vmatprep.subr.bf16.mxu1 %v2122_v10 }
  0xba   : > { %1941 = vmatmul.mubr.msk.f32.vlgmr.msra.gmra.mrb[2].mxu0 %vm232_vm2, %v2203_v32 }
  0xbb   : > { %2015 = vmatpush3.bf16.msra.mxu0 %v2193_v22  ;;  %1947 = vmatprep.mubr.msk.f32.mxu0 %vm2123_vm1, %v2124_v11 }
  0xbc   : > { %2016 = vmatprep.subr.bf16.mxu0 %v2122_v10 }
  0xbe   : > { %1899 = vmatmul.mubr.msk.f32.vlgmr.msra.gmra.mrb[2].mxu1 %vm232_vm2, %v2213_v36 }
  0xbf   : > { %1997 = vmatpush3.bf16.msra.mxu1 %v2193_v22  ;;  %1905 = vmatprep.mubr.msk.f32.mxu1 %vm2123_vm1, %v2124_v11 }
  0xc0   : > { %1998 = vmatprep.subr.bf16.mxu1 %v2122_v10 }
  0xc2   : > { %1948 = vmatmul.mubr.f32.vlgmr.msra.gmra.mrb[2].mxu0 %v1242_v37 }
  0xc3   : > { %2018 = vmatpush3.bf16.msra.mxu0 %v2179_v9  ;;  %1954 = vmatprep.mubr.msk.f32.mxu0 %vm2123_vm1, %v2124_v11 }
  0xc4   : > { %2019 = vmatprep.subr.bf16.mxu0 %v2122_v10 }
  0xc6   : > { %1906 = vmatmul.mubr.f32.vlgmr.msra.gmra.mrb[2].mxu1 %v773_v39 }
  0xc7   : > { %2000 = vmatpush3.bf16.msra.mxu1 %v2179_v9  ;;  %1912 = vmatprep.mubr.msk.f32.mxu1 %vm2123_vm1, %v2124_v11 }
  0xc8   : > { %2001 = vmatprep.subr.bf16.mxu1 %v2122_v10 }
  0xca   : > { %1955 = vmatmul.mubr.f32.vlgmr.msra.gmra.mrb[2].mxu0 %v1243_v40 }
  0xcb   : > { %2021 = vmatpush3.bf16.msra.mxu0 %v2191_v16  ;;  %1961 = vmatprep.mubr.msk.f32.mxu0 %vm2123_vm1, %v2124_v11 }
  0xcc   : > { %2022 = vmatprep.subr.bf16.mxu0 %v2122_v10 }
  0xce   : > { %1913 = vmatmul.mubr.f32.vlgmr.msra.gmra.mrb[2].mxu1 %v774_v42 }
  0xcf   : > { %2003 = vmatpush3.bf16.msra.mxu1 %v2191_v16  ;;  %1919 = vmatprep.mubr.msk.f32.mxu1 %vm2123_vm1, %v2124_v11  ;;  %v1785_v16 = vsel %vm1666_vm9, 1.0, %v2124_v11 }
  0xd0   : > { %2004 = vmatprep.subr.bf16.mxu1 %v2122_v10 }
  0xd2   : > { %1962 = vmatmul.mubr.msk.f32.vlgmr.msra.gmra.mrb[2].mxu0 %vm232_vm2, %v2203_v32 }
  0xd3   : > { %2024 = vmatpush3.bf16.msra.mxu0 %v2179_v9  ;;  %1968 = vmatprep.mubr.msk.f32.mxu0 %vm2123_vm1, %v2124_v11 }
  0xd6   : > { %1920 = vmatmul.mubr.msk.f32.vlgmr.msra.gmra.mrb[2].mxu1 %vm232_vm2, %v2213_v36 }
  0xd7   : > { %2006 = vmatpush3.bf16.msra.mxu1 %v2179_v9  ;;  %1926 = vmatprep.mubr.msk.f32.mxu1 %vm2123_vm1, %v2124_v11 }
  0xda   : > { %1969 = vmatmul.mubr.msk.f32.vlgmr.msra.gmra.mrb[2].mxu0 %vm232_vm2, %v2203_v32 }
  0xde   : > { %1927 = vmatmul.mubr.msk.f32.vlgmr.msra.gmra.mrb[2].mxu1 %vm232_vm2, %v2213_v36 }
 0x181   : > { %v691_v46 = vpop.f32.mrb[0].mxu0 }
 0x182   : > { %v1886_v47 = vpop.f32.mrb[1].mxu0 }
 0x185   : > { %v466_v48 = vpop.f32.mrb[0].mxu1 }
 0x186   : > { %v2025_v49 = vadd.f32 %v691_v46, %v466_v48  ;;  %v1865_v50 = vpop.f32.mrb[1].mxu1 }
 0x1ad   : > { %v1629_v51 = vpop.f32.mrb[2].mxu0 }
 0x1ae   : > { %v1637_v53 = vsub.f32 %v2025_v49, %v1629_v51  ;;  %v1970_v54 = vpop.f32.mrb[3].mxu0 }
 0x1b0   : > { %v1638_v55 = vadd.f32 %v1637_v53, %v1634_v52 }
 0x1b1   : > { %v1160_v56 = vpop.f32.mrb[2].mxu1 }
 0x1b2   : > { %v1635_v57 = vsub.f32 %v2025_v49, %v1160_v56  ;;  %v1928_v58 = vpop.f32.mrb[3].mxu1  ;;  %v1649_v59 = vmul.f32 %v1638_v55, %v1638_v55 }
 0x1b4   : > { %1650 = vadd.xlane.f32.xlu1 %v1649_v59  ;;  %v1636_v60 = vadd.f32 %v1635_v57, %v1634_v52 }
 0x1b6   : > { %v1639_v61 = vmul.f32 %v1636_v60, %v1636_v60 }
 0x1b8   : > { %1640 = vadd.xlane.f32.xlu0 %v1639_v61 }
 0x241   : > { %v1651_v62 = vpop.xlane.xlu1 %1650 }
 0x242   : > { %2078 = vrsqrt.f32 %v1651_v62  ;;  %vm1654_vm7 = vcmp.eq.f32.partialorder %v1651_v62, inf  ;;  %v1657_v5 = vand.u32 2147483648, %v1651_v62  ;;  %vm1656_vm8 = vcmp.eq.f32.partialorder %v1651_v62, 0.0 }
 0x245   : > { %v1641_v63 = vpop.xlane.xlu0 %1640 }
 0x246   : > { %2080 = vrsqrt.f32 %v1641_v63  ;;  %vm1644_vm10 = vcmp.eq.f32.partialorder %v1641_v63, inf  ;;  %v1647_v12 = vand.u32 2147483648, %v1641_v63  ;;  %vm1646_vm11 = vcmp.eq.f32.partialorder %v1641_v63, 0.0 }
 0x24c   : > { %v2079_v2 = vpop.eup %2078 }
 0x24d   : > { %v1653_v3 = vmul.f32 %v2079_v2, %v1651_v62 }
 0x24f   : > { %v1655_v6 = vsel %vm1654_vm7, %v1651_v62, %v1653_v3 }
 0x250   : > { %v2081_v7 = vpop.eup %2080  ;;  %v1658_v8 = vsel %vm1656_vm8, %v1657_v5, %v1655_v6 }
 0x251   : > { %v1643_v9 = vmul.f32 %v2081_v7, %v1641_v63  ;;  %v1659_v10 = vsub.f32 1.0, %v1658_v8 }
 0x253   : > { %v1645_v13 = vsel %vm1644_vm10, %v1641_v63, %v1643_v9  ;;  %v1660_v14 = vmax.f32 %v1659_v10, 0.0 }
 0x254   : > { %v1648_v15 = vsel %vm1646_vm11, %v1647_v12, %v1645_v13 }
 0x255   : > { %v1670_v17 = vadd.f32 %v1660_v14, %v1648_v15 }
 0x257   : > { %v1671_v18 = vmul.f32 %v1785_v16, %v1670_v17 }
 0x259   : > { %v1673_v19 = vsel %vm1672_vm12, %v1671_v18, 0.0 }
 0x25a   : > { %1674 = vadd.xlane.f32.xlu0 %v1673_v19 }
 0x2e7   : > { %v1675_v20 = vpop.xlane.xlu0 %1674 }
 0x2e8   : > { %v1676_v21 = vrot.slane %v1675_v20, 4 }
 0x2ea   : > { %v1677_v22 = vadd.f32 %v1676_v21, %v1675_v20 }
 0x2ec   : > { %v1678_v23 = vrot.slane %v1677_v22, 2 }
 0x2ee   : > { %v1679_v24 = vadd.f32 %v1678_v23, %v1677_v22 }
 0x2f0   : > { %v1680_v25 = vrot.slane %v1679_v24, 1 }
 0x2f2   : > { %v1681_v26 = vadd.f32 %v1680_v25, %v1679_v24 }
 0x2f4   : > { %2054 = vpush %v1681_v26 }
 0x323   : > { %1690 = sbr.rel (%p1786_p5) target bundleno = 820 (0x334), region = 44 }
 0x325   : > { %s2055_s7 = spop %2054 }
 0x326   : > { %v1683_v28 = vstv %s2055_s7 }
 0x327   : > { %v1684_v29 = vadd.f32 %v1683_v28, %v1669_v27 }
 0x329   : > { %1686 = vst.msk [vmem:[#allocation2] sm:$0x1] %vm1685_vm13, %v1684_v29 }
 0x330   : > { %v1691_v11 = vld [vmem:[#allocation2] sm:$0x1] }
 0x331   : > { %v1692_v30 = vmul.f32 0.071428575, %v1691_v11 }
 0x333   : > { %1693 = vst.msk [vmem:[#allocation2] sm:$0x1] %vm1685_vm13, %v1692_v30 }
 0x334 PF: > { %p2060_p6 = scmp.eq.s32.totalorder %s2157_s16, 1  ;;  %s2125_s8 = smov [#allocation2]  }
 0x335   : > { %s1701_s9 = sshll.u32 %s2125_s8, 4  ;;  %s1702_s9 = int_to_ptr.vmem [resolvable:$true] %s1701_s9 }
 0x336   : > { %s2082_s10 = scalar_lea.vmem %s1702_s9, 16  ;;  %s2088_s11 = scalar_lea.vmem %s1702_s9, 32 }
 0x337   : > { %p2083_p7 = scmp.ne.s32.totalorder %s1702_s9, %s2082_s10  ;;  %p2089_p10 = scmp.lt.s32.totalorder %s1702_s9, %s1702_s9 }
 0x338   : > { %p2090_p11 = scmp.lt.s32.totalorder %s2088_s11, %s2082_s10 }
 0x339   : > { %p2084_p8 = pnand %p2083_p7, %p2060_p6 }
 0x33a   : > { %p2091_p12 = por %p2090_p11, %p2089_p10 }
 0x33b   : > { %p2085_p9 = pneg %p2084_p8 }
 0x33d   : > { %p2092_p13 = pnand %p2091_p12, %p2085_p9 }
 0x33f   : > { %2095 = shalt.err (!%p2092_p13)
}
 0x340   : > { %s2096_s14 = scalar_lea.hbm %s2323_s4, 16 }
 0x341   : > { %p2097_p0 = scmp.ne.s32.totalorder %s2323_s4, %s2096_s14  ;;  %p2102_p3 = scmp.lt.u32.totalorder %s2096_s14, %s2323_s4 }
 0x343   : > { %p2098_p1 = pnand %p2097_p0, %p2060_p6 }
 0x345   : > { %p2099_p2 = pneg %p2098_p1 }
 0x347   : > { %p2104_p4 = pnand %p2102_p3, %p2099_p2 }
 0x349   : > { %2107 = shalt.err (!%p2104_p4)
}
 0x34a   : > { %2057 = dma.vmem_to_hbm [thread:$0]  (%p2060_p6), %s1702_s9, 16, %s2323_s4, [#allocation3]  }
 0x34b   : > { %2113 = dma.done.wait (%p2060_p6), [#allocation3], 16  }
 0x34c   : > { %2115 = vsyncadd (%p2060_p6), [#allocation3], 4294967280 }
 0x34d PF: > { %s15_s15 = sadd.s32 1, %s2118_s15  }
 0x34e   : > { %p12_p5 = scmp.ge.s32.totalorder %s15_s15, 4  }
 0x350   :  { %14 = sbr.rel (!%p12_p5) target bundleno = 1 (0x1), region = 77 }
 0x357   :  { %1714 = vsyncpa [#allocation3], 1 }
 0x358   :  { %1716 = vsyncpa [#allocation3 + $0x1], 1 }

</bundles_post_ra>
